<compile_context>
chip_gen: v6e
topology: v6e:2x2x1
jax: 0.10.0
libtpu: 0.0.40
codegen_flags: <defaults>
</compile_context>

<pallas_src>
import jax
import jax.numpy as jnp
from jax import lax
from jax.experimental import pallas as pl
from jax.experimental.pallas import tpu as pltpu

EMBEDDING_SIZE = 100
HIDDEN_SIZE = 128
E_PAD = 128                  # embedding size zero-padded to a full lane width
H = HIDDEN_SIZE
G = 4 * H                    # fused gate width [i|f|g|o]


def _make_encoder_kernel(T: int, unroll: bool):
    """Build the single-invocation LSTM-encoder kernel for sequence length T."""

    def kernel(tok_ref,          # scalar-prefetch: (T,) int32 token ids (SMEM)
               emb_ref,          # (V, E_PAD) f32 embedding table (VMEM-resident)
               h0_ref,           # (1, H)  f32 initial hidden
               c0_ref,           # (1, H)  f32 initial cell
               wih_ref,          # (E_PAD, G) f32 = W_ih^T (rows zero-padded)
               whh_ref,          # (H, G)  f32 = W_hh^T
               b_ref,            # (1, G)  f32 = b_ih + b_hh
               out_ref,          # (T, H)  f32 per-step outputs
               h_out_ref,        # (1, H)  f32 final hidden
               c_out_ref,        # (1, H)  f32 final cell
               x_sc,             # (T, E_PAD) VMEM gathered embeddings
               gx_sc):           # (T, G)  VMEM precomputed x-projection
        # ---- 1) gather all T embedding rows from the VMEM-resident table ----
        def gather(t, carry):
            tok = tok_ref[t]
            x_sc[pl.ds(t, 1), :] = emb_ref[pl.ds(tok, 1), :]
            return carry

        lax.fori_loop(0, T, gather, 0, unroll=unroll)

        # ---- 2) batched input projection: one (T,128)@(128,512) MXU matmul --
        gx_sc[...] = (jnp.dot(x_sc[...], wih_ref[...],
                              preferred_element_type=jnp.float32)
                      + b_ref[...])

        # ---- 3) recurrence over time, fully inside the kernel ---------------
        def step(t, carry):
            h, c = carry                                        # (1,H), (1,H)
            gates = gx_sc[pl.ds(t, 1), :] + jnp.dot(
                h, whh_ref[...], preferred_element_type=jnp.float32)  # (1, G)
            i_g = jax.nn.sigmoid(gates[:, 0 * H:1 * H])
            f_g = jax.nn.sigmoid(gates[:, 1 * H:2 * H])
            g_g = jnp.tanh(gates[:, 2 * H:3 * H])
            o_g = jax.nn.sigmoid(gates[:, 3 * H:4 * H])
            c_new = f_g * c + i_g * g_g
            h_new = o_g * jnp.tanh(c_new)
            out_ref[pl.ds(t, 1), :] = h_new
            return (h_new, c_new)

        h_fin, c_fin = lax.fori_loop(0, T, step,
                                     (h0_ref[...], c0_ref[...]),
                                     unroll=unroll)
        h_out_ref[...] = h_fin
        c_out_ref[...] = c_fin

    return kernel


@jax.jit
def _encoder_pallas_seq(tokens, emb_pad, hidden, cell, wih_t, whh_t, bias):
    """tokens: (T,) int32; emb_pad: (V, E_PAD); hidden/cell: (1, 1, H)."""
    T = tokens.shape[0]
    V = emb_pad.shape[0]
    h2d = hidden.reshape(1, H)
    c2d = cell.reshape(1, H)
    unroll = T <= 16   # short sequences: fully unroll -> static slice indices

    grid_spec = pltpu.PrefetchScalarGridSpec(
        num_scalar_prefetch=1,
        grid=(1,),
        in_specs=[
            pl.BlockSpec((V, E_PAD), lambda i, tok: (0, 0)),   # emb table (VMEM)
            pl.BlockSpec((1, H), lambda i, tok: (0, 0)),       # h0
            pl.BlockSpec((1, H), lambda i, tok: (0, 0)),       # c0
            pl.BlockSpec((E_PAD, G), lambda i, tok: (0, 0)),   # W_ih^T (padded)
            pl.BlockSpec((H, G), lambda i, tok: (0, 0)),       # W_hh^T
            pl.BlockSpec((1, G), lambda i, tok: (0, 0)),       # bias
        ],
        out_specs=[
            pl.BlockSpec((T, H), lambda i, tok: (0, 0)),       # output sequence
            pl.BlockSpec((1, H), lambda i, tok: (0, 0)),       # final hidden
            pl.BlockSpec((1, H), lambda i, tok: (0, 0)),       # final cell
        ],
        scratch_shapes=[
            pltpu.VMEM((T, E_PAD), jnp.float32),               # gathered X
            pltpu.VMEM((T, G), jnp.float32),                   # X @ W_ih^T + b
        ],
    )

    out_seq, h_new, c_new = pl.pallas_call(
        _make_encoder_kernel(T, unroll),
        out_shape=(
            jax.ShapeDtypeStruct((T, H), jnp.float32),
            jax.ShapeDtypeStruct((1, H), jnp.float32),
            jax.ShapeDtypeStruct((1, H), jnp.float32),
        ),
        grid_spec=grid_spec,
        compiler_params=pltpu.CompilerParams(
            dimension_semantics=("arbitrary",)),
    )(tokens, emb_pad, h2d, c2d, wih_t, whh_t, bias)

    return out_seq, h_new, c_new


class EncoderPallas:
    """JAX/Pallas port of the PyTorch Encoder module (embedding + 1-layer LSTM)."""

    def __init__(self, word_vocab, topic_vocab, key):
        assert word_vocab.shape[1] == EMBEDDING_SIZE
        assert topic_vocab.shape[1] == EMBEDDING_SIZE
        pad = E_PAD - EMBEDDING_SIZE
        # Frozen embedding tables, zero-padded along the embedding axis.
        self.word_emb = jnp.pad(jnp.asarray(word_vocab, jnp.float32),
                                ((0, 0), (0, pad)))
        self.topic_emb = jnp.pad(jnp.asarray(topic_vocab, jnp.float32),
                                 ((0, 0), (0, pad)))

        # LSTM parameter init (uniform(-k, k), k = 1/sqrt(H), as torch.nn.LSTM).
        k = 1.0 / jnp.sqrt(jnp.float32(H))
        k1, k2, k3, k4 = jax.random.split(key, 4)
        w_ih = jax.random.uniform(k1, (G, EMBEDDING_SIZE), jnp.float32, -k, k)
        w_hh = jax.random.uniform(k2, (G, H), jnp.float32, -k, k)
        b_ih = jax.random.uniform(k3, (G,), jnp.float32, -k, k)
        b_hh = jax.random.uniform(k4, (G,), jnp.float32, -k, k)

        # Pre-transposed weights: W_ih^T with zero-padded rows (E_PAD, 4H) and
        # W_hh^T (H, 4H); gate column order [i|f|g|o] matches torch.nn.LSTM.
        self.wih_t = jnp.pad(w_ih.T, ((0, pad), (0, 0)))          # (E_PAD, G)
        self.whh_t = w_hh.T                                       # (H, G)
        self.bias = (b_ih + b_hh).reshape(1, G)
        # Un-padded copies for the pure-JAX reference.
        self._w_ih, self._w_hh, self._b_ih, self._b_hh = w_ih, w_hh, b_ih, b_hh

    def initialize(self, key):
        kh, kc = jax.random.split(key)
        hidden = jax.random.normal(kh, (1, 1, H), jnp.float32)
        cell = jax.random.normal(kc, (1, 1, H), jnp.float32)
        return hidden, cell

    # --- Pallas-backed API ----------------------------------------------
    def encode_sequence(self, tokens, hidden, cell, topics=False):
        emb = self.topic_emb if topics else self.word_emb
        tokens = jnp.asarray(tokens, jnp.int32).reshape(-1)
        out_seq, h_new, c_new = _encoder_pallas_seq(
            tokens, emb, hidden, cell, self.wih_t, self.whh_t, self.bias)
        T = tokens.shape[0]
        return (out_seq.reshape(1, T, H),
                h_new.reshape(1, 1, H),
                c_new.reshape(1, 1, H))

    def forward(self, token_id, hidden, cell, topics=False):
        # Single-step forward, matching the PyTorch module's semantics.
        out_seq, h_new, c_new = self.encode_sequence(
            jnp.asarray([token_id], jnp.int32), hidden, cell, topics=topics)
        return out_seq, h_new, c_new   # (1,1,H), (1,1,H), (1,1,H)

    # --- pure-JAX reference (mirrors torch.nn.LSTM) ----------------------
    def _ref_step(self, x, h, c):
        gates = x @ self._w_ih.T + h @ self._w_hh.T + self._b_ih + self._b_hh
        i_g = jax.nn.sigmoid(gates[:, 0 * H:1 * H])
        f_g = jax.nn.sigmoid(gates[:, 1 * H:2 * H])
        g_g = jnp.tanh(gates[:, 2 * H:3 * H])
        o_g = jax.nn.sigmoid(gates[:, 3 * H:4 * H])
        c_new = f_g * c + i_g * g_g
        h_new = o_g * jnp.tanh(c_new)
        return h_new, c_new

    def reference_forward(self, token_id, hidden, cell, topics=False):
        emb = (self.topic_emb if topics else self.word_emb)[token_id, :EMBEDDING_SIZE]
        x = emb.reshape(1, EMBEDDING_SIZE)
        h_new, c_new = self._ref_step(x, hidden.reshape(1, H), cell.reshape(1, H))
        return (h_new.reshape(1, 1, H), h_new.reshape(1, 1, H),
                c_new.reshape(1, 1, H))

    def reference_sequence(self, tokens, hidden, cell, topics=False):
        emb = self.topic_emb if topics else self.word_emb
        h = hidden.reshape(1, H)
        c = cell.reshape(1, H)
        outs = []
        for t in list(jnp.asarray(tokens).tolist()):
            x = emb[int(t), :EMBEDDING_SIZE].reshape(1, EMBEDDING_SIZE)
            h, c = self._ref_step(x, h, c)
            outs.append(h)
        out_seq = jnp.stack(outs, axis=0).reshape(1, len(outs), H)
        return out_seq, h.reshape(1, 1, H), c.reshape(1, 1, H)


if __name__ == "__main__":
    key = jax.random.PRNGKey(0)
    k_wv, k_tv, k_lstm, k_state, k_tok = jax.random.split(key, 5)

    WORD_VOCAB = 48
    TOPIC_VOCAB = 16
    SEQ_LEN = 8
    word_vocab = jax.random.normal(k_wv, (WORD_VOCAB, EMBEDDING_SIZE), jnp.float32)
    topic_vocab = jax.random.normal(k_tv, (TOPIC_VOCAB, EMBEDDING_SIZE), jnp.float32)

    enc = EncoderPallas(word_vocab, topic_vocab, k_lstm)
    hidden, cell = enc.initialize(k_state)

    # Single-step forward, word-embedding branch.
    out, h1, c1 = enc.forward(7, hidden, cell, topics=False)
    jax.block_until_ready((out, h1, c1))
    r_out, r_h, r_c = enc.reference_forward(7, hidden, cell, topics=False)
    assert out.shape == (1, 1, H) and h1.shape == (1, 1, H) and c1.shape == (1, 1, H)
    assert jnp.allclose(out, r_out, atol=1e-5), "word-branch output mismatch"
    assert jnp.allclose(h1, r_h, atol=1e-5), "word-branch hidden mismatch"
    assert jnp.allclose(c1, r_c, atol=1e-5), "word-branch cell mismatch"

    # Single-step forward, topic-embedding branch, feeding state forward.
    out2, h2, c2 = enc.forward(3, h1, c1, topics=True)
    jax.block_until_ready((out2, h2, c2))
    r_out2, r_h2, r_c2 = enc.reference_forward(3, h1, c1, topics=True)
    assert jnp.allclose(out2, r_out2, atol=1e-5), "topic-branch output mismatch"
    assert jnp.allclose(h2, r_h2, atol=1e-5), "topic-branch hidden mismatch"
    assert jnp.allclose(c2, r_c2, atol=1e-5), "topic-branch cell mismatch"

    # Whole-sequence encoding in a single kernel invocation (time loop inside).
    tokens = jax.random.randint(k_tok, (SEQ_LEN,), 0, WORD_VOCAB, dtype=jnp.int32)
    out_seq, hT, cT = enc.encode_sequence(tokens, hidden, cell, topics=False)
    jax.block_until_ready((out_seq, hT, cT))
    r_seq, r_hT, r_cT = enc.reference_sequence(tokens, hidden, cell, topics=False)
    assert out_seq.shape == (1, SEQ_LEN, H)
    assert jnp.allclose(out_seq, r_seq, atol=1e-5), "sequence outputs mismatch"
    assert jnp.allclose(hT, r_hT, atol=1e-5), "sequence final hidden mismatch"
    assert jnp.allclose(cT, r_cT, atol=1e-5), "sequence final cell mismatch"

    print("KERNEL_OK")
</pallas_src>

<mosaic_0001>
module attributes {stable_mosaic.version = 11 : i64} {
  func.func @kernel(%arg0: i32, %arg1: memref<1xi32, #tpu.memory_space<smem>>, %arg2: memref<48x128xf32, #tpu.memory_space<vmem>>, %arg3: memref<1x128xf32, #tpu.memory_space<vmem>>, %arg4: memref<1x128xf32, #tpu.memory_space<vmem>>, %arg5: memref<128x512xf32, #tpu.memory_space<vmem>>, %arg6: memref<128x512xf32, #tpu.memory_space<vmem>>, %arg7: memref<1x512xf32, #tpu.memory_space<vmem>>, %arg8: memref<1x128xf32, #tpu.memory_space<vmem>>, %arg9: memref<1x128xf32, #tpu.memory_space<vmem>>, %arg10: memref<1x128xf32, #tpu.memory_space<vmem>>, %arg11: memref<1x128xf32, #tpu.memory_space<vmem>>, %arg12: memref<1x512xf32, #tpu.memory_space<vmem>>) attributes {dimension_semantics = [#tpu.dimension_semantics<arbitrary>], iteration_bounds = array<i64: 1>, scalar_prefetch = 1 : i64, scratch_operands = 2 : i64, tpu.core_type = #tpu.core_type<tc>, window_params = [{pipeline_mode = #tpu.pipeline_mode<synchronous>, transform_indices = @transform_0, window_bounds = array<i64: 48, 128>}, {pipeline_mode = #tpu.pipeline_mode<synchronous>, transform_indices = @transform_1, window_bounds = array<i64: 1, 128>}, {pipeline_mode = #tpu.pipeline_mode<synchronous>, transform_indices = @transform_2, window_bounds = array<i64: 1, 128>}, {pipeline_mode = #tpu.pipeline_mode<synchronous>, transform_indices = @transform_3, window_bounds = array<i64: 128, 512>}, {pipeline_mode = #tpu.pipeline_mode<synchronous>, transform_indices = @transform_4, window_bounds = array<i64: 128, 512>}, {pipeline_mode = #tpu.pipeline_mode<synchronous>, transform_indices = @transform_5, window_bounds = array<i64: 1, 512>}, {pipeline_mode = #tpu.pipeline_mode<synchronous>, transform_indices = @transform_6, window_bounds = array<i64: 1, 128>}, {pipeline_mode = #tpu.pipeline_mode<synchronous>, transform_indices = @transform_7, window_bounds = array<i64: 1, 128>}, {pipeline_mode = #tpu.pipeline_mode<synchronous>, transform_indices = @transform_8, window_bounds = array<i64: 1, 128>}]} {
    %c0_i32 = arith.constant 0 : i32
    %0 = arith.index_cast %c0_i32 : i32 to index
    %1 = memref.load %arg1[%0] : memref<1xi32, #tpu.memory_space<smem>>
    %2 = arith.index_cast %1 : i32 to index
    %c0 = arith.constant 0 : index
    %3 = vector.load %arg2[%2, %c0] : memref<48x128xf32, #tpu.memory_space<vmem>>, vector<1x128xf32>
    %4 = arith.index_cast %c0_i32 : i32 to index
    %c0_0 = arith.constant 0 : index
    %5 = vector.load %arg11[%4, %c0_0] : memref<1x128xf32, #tpu.memory_space<vmem>>, vector<1x128xf32>
    tpu.vector_store %arg11[%4, %c0_0], %3 {strides = array<i32>} : memref<1x128xf32, #tpu.memory_space<vmem>>, vector<1x128xf32>,
    %c1_i32 = arith.constant 1 : i32
    %c0_1 = arith.constant 0 : index
    %c0_2 = arith.constant 0 : index
    %6 = vector.load %arg11[%c0_1, %c0_2] : memref<1x128xf32, #tpu.memory_space<vmem>>, vector<1x128xf32>
    %c0_3 = arith.constant 0 : index
    %c0_4 = arith.constant 0 : index
    %7 = vector.load %arg5[%c0_3, %c0_4] : memref<128x512xf32, #tpu.memory_space<vmem>>, vector<128x512xf32>
    %cst = arith.constant dense<0.000000e+00> : vector<1x512xf32>
    %8 = tpu.matmul %6, %7, %cst {dimension_numbers = #tpu.dot_dimension_numbers<[1], [0], [0], [1], [0, 0, 1, 1], [], []>} : vector<1x128xf32>, vector<128x512xf32>, vector<1x512xf32> -> vector<1x512xf32>
    %c0_5 = arith.constant 0 : index
    %c0_6 = arith.constant 0 : index
    %9 = vector.load %arg7[%c0_5, %c0_6] : memref<1x512xf32, #tpu.memory_space<vmem>>, vector<1x512xf32>
    %10 = arith.addf %8, %9 : vector<1x512xf32>
    %c0_7 = arith.constant 0 : index
    %c0_8 = arith.constant 0 : index
    %11 = vector.load %arg12[%c0_7, %c0_8] : memref<1x512xf32, #tpu.memory_space<vmem>>, vector<1x512xf32>
    tpu.vector_store %arg12[%c0_7, %c0_8], %10 {strides = array<i32>} : memref<1x512xf32, #tpu.memory_space<vmem>>, vector<1x512xf32>,
    %c0_9 = arith.constant 0 : index
    %c0_10 = arith.constant 0 : index
    %12 = vector.load %arg3[%c0_9, %c0_10] : memref<1x128xf32, #tpu.memory_space<vmem>>, vector<1x128xf32>
    %c0_11 = arith.constant 0 : index
    %c0_12 = arith.constant 0 : index
    %13 = vector.load %arg4[%c0_11, %c0_12] : memref<1x128xf32, #tpu.memory_space<vmem>>, vector<1x128xf32>
    %c0_i32_13 = arith.constant 0 : i32
    %14 = arith.index_cast %c0_i32_13 : i32 to index
    %c0_14 = arith.constant 0 : index
    %15 = vector.load %arg12[%14, %c0_14] : memref<1x512xf32, #tpu.memory_space<vmem>>, vector<1x512xf32>
    %c0_15 = arith.constant 0 : index
    %c0_16 = arith.constant 0 : index
    %16 = vector.load %arg6[%c0_15, %c0_16] : memref<128x512xf32, #tpu.memory_space<vmem>>, vector<128x512xf32>
    %cst_17 = arith.constant dense<0.000000e+00> : vector<1x512xf32>
    %17 = tpu.matmul %12, %16, %cst_17 {dimension_numbers = #tpu.dot_dimension_numbers<[1], [0], [0], [1], [0, 0, 1, 1], [], []>} : vector<1x128xf32>, vector<128x512xf32>, vector<1x512xf32> -> vector<1x512xf32>
    %18 = arith.addf %15, %17 : vector<1x512xf32>
    %19 = vector.extract_strided_slice %18 {offsets = [0, 0], sizes = [1, 128], strides = [1, 1]} : vector<1x512xf32> to vector<1x128xf32>
    %20 = arith.negf %19 : vector<1x128xf32>
    %21 = math.exp %20 : vector<1x128xf32>
    %cst_18 = arith.constant 1.000000e+00 : f32
    %22 = vector.broadcast %cst_18 : f32 to vector<1x128xf32>
    %23 = arith.addf %22, %21 : vector<1x128xf32>
    %24 = arith.divf %22, %23 : vector<1x128xf32>
    %25 = vector.extract_strided_slice %18 {offsets = [0, 128], sizes = [1, 128], strides = [1, 1]} : vector<1x512xf32> to vector<1x128xf32>
    %26 = arith.negf %25 : vector<1x128xf32>
    %27 = math.exp %26 : vector<1x128xf32>
    %cst_19 = arith.constant 1.000000e+00 : f32
    %28 = vector.broadcast %cst_19 : f32 to vector<1x128xf32>
    %29 = arith.addf %28, %27 : vector<1x128xf32>
    %30 = arith.divf %28, %29 : vector<1x128xf32>
    %31 = vector.extract_strided_slice %18 {offsets = [0, 256], sizes = [1, 128], strides = [1, 1]} : vector<1x512xf32> to vector<1x128xf32>
    %32 = math.tanh %31 : vector<1x128xf32>
    %33 = vector.extract_strided_slice %18 {offsets = [0, 384], sizes = [1, 128], strides = [1, 1]} : vector<1x512xf32> to vector<1x128xf32>
    %34 = arith.negf %33 : vector<1x128xf32>
    %35 = math.exp %34 : vector<1x128xf32>
    %cst_20 = arith.constant 1.000000e+00 : f32
    %36 = vector.broadcast %cst_20 : f32 to vector<1x128xf32>
    %37 = arith.addf %36, %35 : vector<1x128xf32>
    %38 = arith.divf %36, %37 : vector<1x128xf32>
    %39 = arith.mulf %30, %13 : vector<1x128xf32>
    %40 = arith.mulf %24, %32 : vector<1x128xf32>
    %41 = arith.addf %39, %40 : vector<1x128xf32>
    %42 = math.tanh %41 : vector<1x128xf32>
    %43 = arith.mulf %38, %42 : vector<1x128xf32>
    %44 = arith.index_cast %c0_i32_13 : i32 to index
    %c0_21 = arith.constant 0 : index
    %45 = vector.load %arg8[%44, %c0_21] : memref<1x128xf32, #tpu.memory_space<vmem>>, vector<1x128xf32>
    tpu.vector_store %arg8[%44, %c0_21], %43 {strides = array<i32>} : memref<1x128xf32, #tpu.memory_space<vmem>>, vector<1x128xf32>,
    %c1_i32_22 = arith.constant 1 : i32
    %c0_23 = arith.constant 0 : index
    %c0_24 = arith.constant 0 : index
    %46 = vector.load %arg9[%c0_23, %c0_24] : memref<1x128xf32, #tpu.memory_space<vmem>>, vector<1x128xf32>
    tpu.vector_store %arg9[%c0_23, %c0_24], %43 {strides = array<i32>} : memref<1x128xf32, #tpu.memory_space<vmem>>, vector<1x128xf32>,
    %c0_25 = arith.constant 0 : index
    %c0_26 = arith.constant 0 : index
    %47 = vector.load %arg10[%c0_25, %c0_26] : memref<1x128xf32, #tpu.memory_space<vmem>>, vector<1x128xf32>
    tpu.vector_store %arg10[%c0_25, %c0_26], %41 {strides = array<i32>} : memref<1x128xf32, #tpu.memory_space<vmem>>, vector<1x128xf32>,
    return
  }
  func.func @transform_0(%arg0: i32, %arg1: memref<1xi32, #tpu.memory_space<smem>>) -> (i32, i32) {
    %c0_i32 = arith.constant 0 : i32
    %c0_i32_0 = arith.constant 0 : i32
    %c0_i32_1 = arith.constant 0 : i32
    return %c0_i32, %c0_i32_0 : i32, i32
  }
  func.func @transform_1(%arg0: i32, %arg1: memref<1xi32, #tpu.memory_space<smem>>) -> (i32, i32) {
    %c0_i32 = arith.constant 0 : i32
    %c0_i32_0 = arith.constant 0 : i32
    %c0_i32_1 = arith.constant 0 : i32
    return %c0_i32, %c0_i32_0 : i32, i32
  }
  func.func @transform_2(%arg0: i32, %arg1: memref<1xi32, #tpu.memory_space<smem>>) -> (i32, i32) {
    %c0_i32 = arith.constant 0 : i32
    %c0_i32_0 = arith.constant 0 : i32
    %c0_i32_1 = arith.constant 0 : i32
    return %c0_i32, %c0_i32_0 : i32, i32
  }
  func.func @transform_3(%arg0: i32, %arg1: memref<1xi32, #tpu.memory_space<smem>>) -> (i32, i32) {
    %c0_i32 = arith.constant 0 : i32
    %c0_i32_0 = arith.constant 0 : i32
    %c0_i32_1 = arith.constant 0 : i32
    return %c0_i32, %c0_i32_0 : i32, i32
  }
  func.func @transform_4(%arg0: i32, %arg1: memref<1xi32, #tpu.memory_space<smem>>) -> (i32, i32) {
    %c0_i32 = arith.constant 0 : i32
    %c0_i32_0 = arith.constant 0 : i32
    %c0_i32_1 = arith.constant 0 : i32
    return %c0_i32, %c0_i32_0 : i32, i32
  }
  func.func @transform_5(%arg0: i32, %arg1: memref<1xi32, #tpu.memory_space<smem>>) -> (i32, i32) {
    %c0_i32 = arith.constant 0 : i32
    %c0_i32_0 = arith.constant 0 : i32
    %c0_i32_1 = arith.constant 0 : i32
    return %c0_i32, %c0_i32_0 : i32, i32
  }
  func.func @transform_6(%arg0: i32, %arg1: memref<1xi32, #tpu.memory_space<smem>>) -> (i32, i32) {
    %c0_i32 = arith.constant 0 : i32
    %c0_i32_0 = arith.constant 0 : i32
    %c0_i32_1 = arith.constant 0 : i32
    return %c0_i32, %c0_i32_0 : i32, i32
  }
  func.func @transform_7(%arg0: i32, %arg1: memref<1xi32, #tpu.memory_space<smem>>) -> (i32, i32) {
    %c0_i32 = arith.constant 0 : i32
    %c0_i32_0 = arith.constant 0 : i32
    %c0_i32_1 = arith.constant 0 : i32
    return %c0_i32, %c0_i32_0 : i32, i32
  }
  func.func @transform_8(%arg0: i32, %arg1: memref<1xi32, #tpu.memory_space<smem>>) -> (i32, i32) {
    %c0_i32 = arith.constant 0 : i32
    %c0_i32_0 = arith.constant 0 : i32
    %c0_i32_1 = arith.constant 0 : i32
    return %c0_i32, %c0_i32_0 : i32, i32
  }
}

</mosaic_0001>

<bundles_post_ra>
// kernel: _encoder_pallas_seq.1
= control target key start
LH: loop header
LB: loop body
LE: loop exit
PB: predicated region body
PF: predicated region fallthrough
CT: control target
= control target key end

     0   :  { %16 = vsyncpa [#allocation7], 0  ;;  %s910_s0 = inlined_call_operand.<no memory space> [shape: s32[1], index: 0, kind: input, shape index: {}]   ;;  %s911_s1 = inlined_call_operand.hbm [shape: f32[48,128], index: 1, kind: input, shape index: {}]   ;;  %s912_s2 = inlined_call_operand.vmem [shape: f32[1,128], index: 2, kind: input, shape index: {}]   ;;  %s913_s3 = inlined_call_operand.vmem [shape: f32[1,128], index: 3, kind: input, shape index: {}]   ;;  %s914_s4 = inlined_call_operand.hbm [shape: f32[128,512], index: 4, kind: input, shape index: {}]   ;;  %s915_s5 = inlined_call_operand.hbm [shape: f32[128,512], index: 5, kind: input, shape index: {}]   ;;  %s916_s6 = inlined_call_operand.vmem [shape: f32[1,512], index: 6, kind: input, shape index: {}]   ;;  %s917_s7 = inlined_call_operand.hbm [shape: f32[1,128], index: 7, kind: output, shape index: {0}]   ;;  %s918_s8 = inlined_call_operand.hbm [shape: f32[1,128], index: 8, kind: output, shape index: {1}]   ;;  %s919_s9 = inlined_call_operand.hbm [shape: f32[1,128], index: 9, kind: output, shape index: {2}]  }
   0x1   :  { %17 = vsyncpa [#allocation10], 0 }
   0x2   :  { %18 = vsyncpa [#allocation8], 0 }
   0x3   :  { %19 = vsyncpa [#allocation14], 0  ;;  %s814_s30 = smov [#allocation9]  }
   0x4   :  { %s41_s10 = sshll.u32 %s814_s30, 4  ;;  %s42_s10 = int_to_ptr.vmem [resolvable:$true] %s41_s10 }
   0x5   :  { %s694_s11 = scalar_lea.vmem %s42_s10, 8192  ;;  %p699_p1 = scmp.lt.s32.totalorder %s42_s10, %s42_s10 }
   0x6   :  { %p695_p0 = scmp.ne.s32.totalorder %s42_s10, %s694_s11  ;;  %p700_p2 = scmp.lt.s32.totalorder %s694_s11, %s694_s11 }
   0x8   :  { %p701_p3 = por %p700_p2, %p699_p1 }
   0xa   :  { %p702_p4 = pnand %p701_p3, %p695_p0 }
   0xc   :  { %705 = shalt.err (!%p702_p4)
}
   0xd   :  { %s815_s12 = smov 512   ;;  %s816_s13 = smov 32  }
   0xe   :  { %47 = dma.hbm_to_vmem [thread:$0]  %s914_s4, 8192, %s42_s10, [#allocation10], %s815_s12, %s815_s12, %s816_s13  }
   0xf   :  { %s817_s16 = smov [#allocation6]  }
  0x10   :  { %s25_s17 = sshll.u32 %s817_s16, 4  ;;  %s26_s17 = int_to_ptr.vmem [resolvable:$true] %s25_s17 }
  0x11   :  { %s714_s18 = scalar_lea.vmem %s26_s17, 768  ;;  %p719_p6 = scmp.lt.s32.totalorder %s26_s17, %s26_s17 }
  0x12   :  { %p715_p5 = scmp.ne.s32.totalorder %s26_s17, %s714_s18  ;;  %p720_p7 = scmp.lt.s32.totalorder %s714_s18, %s714_s18 }
  0x14   :  { %p721_p8 = por %p720_p7, %p719_p6 }
  0x16   :  { %p722_p9 = pnand %p721_p8, %p715_p5 }
  0x18   :  { %725 = shalt.err (!%p722_p9)
}
  0x19   :  { %s818_s19 = smov 128   ;;  %s819_s20 = smov 8  }
  0x1a   :  { %31 = dma.hbm_to_vmem [thread:$0]  %s911_s1, 768, %s26_s17, [#allocation7], %s818_s19, %s818_s19, %s819_s20  }
  0x1b   :  { %s820_s23 = smov [#allocation11]  }
  0x1c   :  { %s53_s24 = sshll.u32 %s820_s23, 4  ;;  %s54_s24 = int_to_ptr.vmem [resolvable:$true] %s53_s24 }
  0x1d   :  { %s734_s4 = scalar_lea.vmem %s54_s24, 8192  ;;  %p739_p11 = scmp.lt.s32.totalorder %s54_s24, %s54_s24 }
  0x1e   :  { %p735_p10 = scmp.ne.s32.totalorder %s54_s24, %s734_s4  ;;  %p740_p12 = scmp.lt.s32.totalorder %s734_s4, %s734_s4 }
  0x20   :  { %p741_p13 = por %p740_p12, %p739_p11 }
  0x22   :  { %p742_p0 = pnand %p741_p13, %p735_p10 }
  0x24   :  { %745 = shalt.err (!%p742_p0)
}
  0x25   :  { %59 = dma.hbm_to_vmem [thread:$0]  %s915_s5, 8192, %s54_s24, [#allocation10], %s815_s12, %s815_s12, %s816_s13  }
  0x26   :  { %806 = dma.done.wait [#allocation7], 768  }
  0x27   :  { %807 = vsyncadd [#allocation7], 4294966528 }
  0x28   :  { %808 = dma.done.wait [#allocation10], 16384  }
  0x29   :  { %809 = vsyncadd [#allocation10], 4294950912  ;;  %v821_v0 = vmov 0.0   ;;  %v137_v1 = vld [vmem:[#allocation9 + $0x1e8] sm:$0xff]  ;;  %v139_v2 = vld [vmem:[#allocation9 + $0x1f8] sm:$0xff]  ;;  %s72_s27 = scalar_lea.vmem [#allocation6], %s910_s0 }
  0x2a   :  { %226 = vmatprep.mubr.f32.mxu0 %v821_v0  ;;  %297 = vmatprep.mubr.f32.mxu1 %v821_v0  ;;  %v136_v3 = vld [vmem:[#allocation9 + $0x1e0] sm:$0xff]  ;;  %v138_v4 = vld [vmem:[#allocation9 + $0x1f0] sm:$0xff]  ;;  %v133_v5 = vld [vmem:[#allocation9 + $0x1c8] sm:$0xff]  ;;  %s823_s10 = smov [#allocation13]   ;;  %s824_s12 = smov [#allocation12]  }
  0x2b   :  { %162 = vmatprep.subr.mxu0 %v137_v1  ;;  %233 = vmatprep.subr.mxu1 %v139_v2  ;;  %v135_v6 = vld [vmem:[#allocation9 + $0x1d8] sm:$0xff]  ;;  %v132_v7 = vld [vmem:[#allocation9 + $0x1c0] sm:$0xff]  ;;  %v134_v8 = vld [vmem:[#allocation9 + $0x1d0] sm:$0xff]  ;;  %s627_s11 = sshll.u32 %s823_s10, 4  ;;  %s617_s13 = sshll.u32 %s824_s12, 4  ;;  %s628_s11 = int_to_ptr.vmem [resolvable:$true] %s627_s11  ;;  %s618_s13 = int_to_ptr.vmem [resolvable:$true] %s617_s13 }
  0x2c   :  { %163 = vmatpush1.msra.mxu0 %v136_v3  ;;  %234 = vmatpush1.msra.mxu1 %v138_v4  ;;  %v129_v9 = vld [vmem:[#allocation9 + $0x1a8] sm:$0xff]  ;;  %v131_v10 = vld [vmem:[#allocation9 + $0x1b8] sm:$0xff]  ;;  %v128_v11 = vld [vmem:[#allocation9 + $0x1a0] sm:$0xff]  ;;  %s825_s14 = smov [#allocation15]   ;;  %s750_s16 = scalar_lea.vmem %s628_s11, 32 }
  0x2d   :  { %164 = vmatprep.subr.mxu0 %v133_v5  ;;  %235 = vmatprep.subr.mxu1 %v135_v6  ;;  %v130_v12 = vld [vmem:[#allocation9 + $0x1b0] sm:$0xff]  ;;  %v125_v13 = vld [vmem:[#allocation9 + $0x188] sm:$0xff]  ;;  %v127_v14 = vld [vmem:[#allocation9 + $0x198] sm:$0xff]  ;;  %s637_s15 = sshll.u32 %s825_s14, 4  ;;  %p751_p2 = scmp.lt.s32.totalorder %s628_s11, %s628_s11  ;;  %s638_s15 = int_to_ptr.vmem [resolvable:$true] %s637_s15 }
  0x2e   :  { %165 = vmatpush1.msra.mxu0 %v132_v7  ;;  %236 = vmatpush1.msra.mxu1 %v134_v8  ;;  %v124_v15 = vld [vmem:[#allocation9 + $0x180] sm:$0xff]  ;;  %v126_v16 = vld [vmem:[#allocation9 + $0x190] sm:$0xff]  ;;  %v121_v17 = vld [vmem:[#allocation9 + $0x168] sm:$0xff] }
  0x2f   :  { %166 = vmatprep.subr.mxu0 %v129_v9  ;;  %237 = vmatprep.subr.mxu1 %v131_v10  ;;  %v123_v18 = vld [vmem:[#allocation9 + $0x178] sm:$0xff]  ;;  %v120_v19 = vld [vmem:[#allocation9 + $0x160] sm:$0xff]  ;;  %v122_v20 = vld [vmem:[#allocation9 + $0x170] sm:$0xff] }
  0x30   :  { %167 = vmatpush1.msra.mxu0 %v128_v11  ;;  %238 = vmatpush1.msra.mxu1 %v130_v12  ;;  %v117_v21 = vld [vmem:[#allocation9 + $0x148] sm:$0xff]  ;;  %v119_v22 = vld [vmem:[#allocation9 + $0x158] sm:$0xff]  ;;  %v116_v23 = vld [vmem:[#allocation9 + $0x140] sm:$0xff] }
  0x31   :  { %168 = vmatprep.subr.mxu0 %v125_v13  ;;  %239 = vmatprep.subr.mxu1 %v127_v14  ;;  %v118_v24 = vld [vmem:[#allocation9 + $0x150] sm:$0xff]  ;;  %v113_v25 = vld [vmem:[#allocation9 + $0x128] sm:$0xff]  ;;  %v115_v26 = vld [vmem:[#allocation9 + $0x138] sm:$0xff] }
  0x32   :  { %169 = vmatpush1.msra.mxu0 %v124_v15  ;;  %240 = vmatpush1.msra.mxu1 %v126_v16  ;;  %v112_v27 = vld [vmem:[#allocation9 + $0x120] sm:$0xff]  ;;  %v114_v28 = vld [vmem:[#allocation9 + $0x130] sm:$0xff]  ;;  %v109_v29 = vld [vmem:[#allocation9 + $0x108] sm:$0xff] }
  0x33   :  { %170 = vmatprep.subr.mxu0 %v121_v17  ;;  %241 = vmatprep.subr.mxu1 %v123_v18  ;;  %v111_v30 = vld [vmem:[#allocation9 + $0x118] sm:$0xff]  ;;  %v108_v31 = vld [vmem:[#allocation9 + $0x100] sm:$0xff]  ;;  %v110_v32 = vld [vmem:[#allocation9 + $0x110] sm:$0xff] }
  0x34   :  { %171 = vmatpush1.msra.mxu0 %v120_v19  ;;  %242 = vmatpush1.msra.mxu1 %v122_v20  ;;  %v105_v33 = vld [vmem:[#allocation9 + $0xe8] sm:$0xff]  ;;  %v107_v34 = vld [vmem:[#allocation9 + $0xf8] sm:$0xff]  ;;  %v104_v35 = vld [vmem:[#allocation9 + $0xe0] sm:$0xff] }
  0x35   :  { %172 = vmatprep.subr.mxu0 %v117_v21  ;;  %243 = vmatprep.subr.mxu1 %v119_v22  ;;  %v106_v36 = vld [vmem:[#allocation9 + $0xf0] sm:$0xff]  ;;  %v101_v37 = vld [vmem:[#allocation9 + $0xc8] sm:$0xff]  ;;  %v103_v38 = vld [vmem:[#allocation9 + $0xd8] sm:$0xff] }
  0x36   :  { %173 = vmatpush1.msra.mxu0 %v116_v23  ;;  %244 = vmatpush1.msra.mxu1 %v118_v24  ;;  %v100_v39 = vld [vmem:[#allocation9 + $0xc0] sm:$0xff]  ;;  %v102_v40 = vld [vmem:[#allocation9 + $0xd0] sm:$0xff]  ;;  %v97_v41 = vld [vmem:[#allocation9 + $0xa8] sm:$0xff] }
  0x37   :  { %174 = vmatprep.subr.mxu0 %v113_v25  ;;  %245 = vmatprep.subr.mxu1 %v115_v26  ;;  %v99_v42 = vld [vmem:[#allocation9 + $0xb8] sm:$0xff]  ;;  %v96_v43 = vld [vmem:[#allocation9 + $0xa0] sm:$0xff]  ;;  %v98_v44 = vld [vmem:[#allocation9 + $0xb0] sm:$0xff] }
  0x38   :  { %175 = vmatpush1.msra.mxu0 %v112_v27  ;;  %246 = vmatpush1.msra.mxu1 %v114_v28  ;;  %v93_v45 = vld [vmem:[#allocation9 + $0x88] sm:$0xff]  ;;  %v95_v46 = vld [vmem:[#allocation9 + $0x98] sm:$0xff]  ;;  %v92_v47 = vld [vmem:[#allocation9 + $0x80] sm:$0xff] }
  0x39   :  { %176 = vmatprep.subr.mxu0 %v109_v29  ;;  %247 = vmatprep.subr.mxu1 %v111_v30  ;;  %v94_v48 = vld [vmem:[#allocation9 + $0x90] sm:$0xff]  ;;  %v73_v49 = vld [vmem:[%s72_s27] sm:$0x1]  ;;  %v91_v51 = vld [vmem:[#allocation9 + $0x78] sm:$0xff] }
  0x3a   :  { %177 = vmatpush1.msra.mxu0 %v108_v31  ;;  %248 = vmatpush1.msra.mxu1 %v110_v32  ;;  %v89_v50 = vld [vmem:[#allocation9 + $0x68] sm:$0xff]  ;;  %74 = vst [vmem:[#allocation2] sm:$0x1] %v73_v49  ;;  %v88_v52 = vld [vmem:[#allocation9 + $0x60] sm:$0xff]  ;;  %v90_v53 = vld [vmem:[#allocation9 + $0x70] sm:$0xff] }
  0x3b   :  { %178 = vmatprep.subr.mxu0 %v105_v33  ;;  %249 = vmatprep.subr.mxu1 %v107_v34  ;;  %v85_v54 = vld [vmem:[#allocation9 + $0x48] sm:$0xff]  ;;  %v87_v55 = vld [vmem:[#allocation9 + $0x58] sm:$0xff]  ;;  %v84_v56 = vld [vmem:[#allocation9 + $0x40] sm:$0xff] }
  0x3c   :  { %179 = vmatpush1.msra.mxu0 %v104_v35  ;;  %250 = vmatpush1.msra.mxu1 %v106_v36  ;;  %v86_v57 = vld [vmem:[#allocation9 + $0x50] sm:$0xff]  ;;  %v81_v58 = vld [vmem:[#allocation9 + $0x28] sm:$0xff]  ;;  %v83_v59 = vld [vmem:[#allocation9 + $0x38] sm:$0xff] }
  0x3d   :  { %180 = vmatprep.subr.mxu0 %v101_v37  ;;  %251 = vmatprep.subr.mxu1 %v103_v38  ;;  %v80_v60 = vld [vmem:[#allocation9 + $0x20] sm:$0xff]  ;;  %v82_v61 = vld [vmem:[#allocation9 + $0x30] sm:$0xff]  ;;  %v77_v62 = vld [vmem:[#allocation9 + $0x8] sm:$0xff] }
  0x3e   :  { %181 = vmatpush1.msra.mxu0 %v100_v39  ;;  %252 = vmatpush1.msra.mxu1 %v102_v40  ;;  %v79_v63 = vld [vmem:[#allocation9 + $0x18] sm:$0xff]  ;;  %v76_v1 = vld [vmem:[#allocation9] sm:$0xff]  ;;  %v78_v2 = vld [vmem:[#allocation9 + $0x10] sm:$0xff] }
  0x3f   :  { %182 = vmatprep.subr.mxu0 %v97_v41  ;;  %253 = vmatprep.subr.mxu1 %v99_v42  ;;  %v402_v4 = vld [vmem:[#allocation11 + $0x1e8] sm:$0xff]  ;;  %v404_v5 = vld [vmem:[#allocation11 + $0x1f8] sm:$0xff]  ;;  %v401_v6 = vld [vmem:[#allocation11 + $0x1e0] sm:$0xff] }
  0x40   :  { %183 = vmatpush1.msra.mxu0 %v96_v43  ;;  %254 = vmatpush1.msra.mxu1 %v98_v44  ;;  %v403_v7 = vld [vmem:[#allocation11 + $0x1f0] sm:$0xff]  ;;  %v398_v8 = vld [vmem:[#allocation11 + $0x1c8] sm:$0xff]  ;;  %v400_v9 = vld [vmem:[#allocation11 + $0x1d8] sm:$0xff] }
  0x41   :  { %184 = vmatprep.subr.mxu0 %v93_v45  ;;  %255 = vmatprep.subr.mxu1 %v95_v46  ;;  %v75_v3 = vld [vmem:[#allocation2] sm:$0x1]  ;;  %v397_v10 = vld [vmem:[#allocation11 + $0x1c0] sm:$0xff]  ;;  %v399_v11 = vld [vmem:[#allocation11 + $0x1d0] sm:$0xff] }
  0x42   :  { %185 = vmatpush1.msra.mxu0 %v92_v47  ;;  %256 = vmatpush1.msra.mxu1 %v94_v48  ;;  %v394_v12 = vld [vmem:[#allocation11 + $0x1a8] sm:$0xff]  ;;  %v396_v13 = vld [vmem:[#allocation11 + $0x1b8] sm:$0xff]  ;;  %v393_v14 = vld [vmem:[#allocation11 + $0x1a0] sm:$0xff] }
  0x43   :  { %186 = vmatprep.subr.mxu0 %v89_v50  ;;  %257 = vmatprep.subr.mxu1 %v91_v51  ;;  %v395_v15 = vld [vmem:[#allocation11 + $0x1b0] sm:$0xff]  ;;  %v390_v16 = vld [vmem:[#allocation11 + $0x188] sm:$0xff]  ;;  %v392_v17 = vld [vmem:[#allocation11 + $0x198] sm:$0xff] }
  0x44   :  { %187 = vmatpush1.msra.mxu0 %v88_v52  ;;  %258 = vmatpush1.msra.mxu1 %v90_v53  ;;  %v389_v18 = vld [vmem:[#allocation11 + $0x180] sm:$0xff]  ;;  %v391_v19 = vld [vmem:[#allocation11 + $0x190] sm:$0xff]  ;;  %v386_v20 = vld [vmem:[#allocation11 + $0x168] sm:$0xff] }
  0x45   :  { %188 = vmatprep.subr.mxu0 %v85_v54  ;;  %259 = vmatprep.subr.mxu1 %v87_v55  ;;  %v388_v21 = vld [vmem:[#allocation11 + $0x178] sm:$0xff]  ;;  %v385_v22 = vld [vmem:[#allocation11 + $0x160] sm:$0xff]  ;;  %v387_v23 = vld [vmem:[#allocation11 + $0x170] sm:$0xff] }
  0x46   :  { %189 = vmatpush1.msra.mxu0 %v84_v56  ;;  %260 = vmatpush1.msra.mxu1 %v86_v57  ;;  %v382_v24 = vld [vmem:[#allocation11 + $0x148] sm:$0xff]  ;;  %v384_v25 = vld [vmem:[#allocation11 + $0x158] sm:$0xff]  ;;  %v381_v26 = vld [vmem:[#allocation11 + $0x140] sm:$0xff] }
  0x47   :  { %190 = vmatprep.subr.mxu0 %v81_v58  ;;  %261 = vmatprep.subr.mxu1 %v83_v59  ;;  %v383_v27 = vld [vmem:[#allocation11 + $0x150] sm:$0xff]  ;;  %v378_v28 = vld [vmem:[#allocation11 + $0x128] sm:$0xff]  ;;  %v380_v29 = vld [vmem:[#allocation11 + $0x138] sm:$0xff] }
  0x48   :  { %191 = vmatpush1.msra.mxu0 %v80_v60  ;;  %262 = vmatpush1.msra.mxu1 %v82_v61  ;;  %v377_v30 = vld [vmem:[#allocation11 + $0x120] sm:$0xff]  ;;  %v379_v31 = vld [vmem:[#allocation11 + $0x130] sm:$0xff]  ;;  %v374_v32 = vld [vmem:[#allocation11 + $0x108] sm:$0xff] }
  0x49   :  { %192 = vmatprep.subr.mxu0 %v77_v62  ;;  %263 = vmatprep.subr.mxu1 %v79_v63  ;;  %v376_v33 = vld [vmem:[#allocation11 + $0x118] sm:$0xff]  ;;  %v373_v34 = vld [vmem:[#allocation11 + $0x100] sm:$0xff]  ;;  %v375_v35 = vld [vmem:[#allocation11 + $0x110] sm:$0xff] }
  0x4a   :  { %193 = vmatpush1.msra.mxu0 %v76_v1  ;;  %264 = vmatpush1.msra.mxu1 %v78_v2  ;;  %v370_v36 = vld [vmem:[#allocation11 + $0xe8] sm:$0xff]  ;;  %v372_v37 = vld [vmem:[#allocation11 + $0xf8] sm:$0xff]  ;;  %v369_v38 = vld [vmem:[#allocation11 + $0xe0] sm:$0xff] }
  0x4b   :  { %227 = vmatmul.mubr.f32.vlgmr.msra.gmra.mxu0 %v75_v3  ;;  %298 = vmatmul.mubr.f32.vlgmr.msra.gmra.mxu1 %v75_v3  ;;  %v371_v39 = vld [vmem:[#allocation11 + $0xf0] sm:$0xff]  ;;  %v366_v40 = vld [vmem:[#allocation11 + $0xc8] sm:$0xff]  ;;  %v368_v41 = vld [vmem:[#allocation11 + $0xd8] sm:$0xff] }
  0x4c   :  { %405 = vmatprep.subr.mxu0 %v402_v4  ;;  %476 = vmatprep.subr.mxu1 %v404_v5  ;;  %v365_v42 = vld [vmem:[#allocation11 + $0xc0] sm:$0xff]  ;;  %v367_v43 = vld [vmem:[#allocation11 + $0xd0] sm:$0xff]  ;;  %v362_v44 = vld [vmem:[#allocation11 + $0xa8] sm:$0xff] }
  0x4d   :  { %406 = vmatpush1.msra.mxu0 %v401_v6  ;;  %477 = vmatpush1.msra.mxu1 %v403_v7  ;;  %v364_v45 = vld [vmem:[#allocation11 + $0xb8] sm:$0xff]  ;;  %v361_v46 = vld [vmem:[#allocation11 + $0xa0] sm:$0xff]  ;;  %v363_v47 = vld [vmem:[#allocation11 + $0xb0] sm:$0xff]  ;;  %v142_v6 = vlaneseq }
  0x4e   :  { %407 = vmatprep.subr.mxu0 %v398_v8  ;;  %478 = vmatprep.subr.mxu1 %v400_v9  ;;  %v358_v48 = vld [vmem:[#allocation11 + $0x88] sm:$0xff]  ;;  %v360_v49 = vld [vmem:[#allocation11 + $0x98] sm:$0xff]  ;;  %v357_v50 = vld [vmem:[#allocation11 + $0x80] sm:$0xff] }
  0x4f   :  { %408 = vmatpush1.msra.mxu0 %v397_v10  ;;  %479 = vmatpush1.msra.mxu1 %v399_v11  ;;  %v359_v51 = vld [vmem:[#allocation11 + $0x90] sm:$0xff]  ;;  %v354_v52 = vld [vmem:[#allocation11 + $0x68] sm:$0xff]  ;;  %v356_v53 = vld [vmem:[#allocation11 + $0x78] sm:$0xff]  ;;  %v143_v7 = vshrl.u32 %v142_v6, 7  ;;  %vm335_vm0 = vcmp.lt.s32.totalorder %v142_v6, 512 }
  0x50   :  { %409 = vmatprep.subr.mxu0 %v394_v12  ;;  %480 = vmatprep.subr.mxu1 %v396_v13  ;;  %v353_v54 = vld [vmem:[#allocation11 + $0x60] sm:$0xff]  ;;  %v355_v55 = vld [vmem:[#allocation11 + $0x70] sm:$0xff]  ;;  %v350_v56 = vld [vmem:[#allocation11 + $0x48] sm:$0xff]  ;;  %v822_v12 = vmov 1966171168  }
  0x51   :  { %410 = vmatpush1.msra.mxu0 %v393_v14  ;;  %481 = vmatpush1.msra.mxu1 %v395_v15  ;;  %v352_v57 = vld [vmem:[#allocation11 + $0x58] sm:$0xff]  ;;  %v349_v58 = vld [vmem:[#allocation11 + $0x40] sm:$0xff]  ;;  %v351_v59 = vld [vmem:[#allocation11 + $0x50] sm:$0xff]  ;;  %v144_v8 = vsub.s32 0, %v143_v7  ;;  %v152_v9 = vsub.s32 2, %v143_v7  ;;  %v148_v11 = vsub.s32 1, %v143_v7  ;;  %v311_v13 = vunpack.c.l.s4 %v822_v12 }
  0x52   :  { %411 = vmatprep.subr.mxu0 %v390_v16  ;;  %482 = vmatprep.subr.mxu1 %v392_v17  ;;  %v346_v60 = vld [vmem:[#allocation11 + $0x28] sm:$0xff]  ;;  %v348_v61 = vld [vmem:[#allocation11 + $0x38] sm:$0xff]  ;;  %v345_v62 = vld [vmem:[#allocation11 + $0x20] sm:$0xff]  ;;  %v156_v14 = vsub.s32 3, %v143_v7 }
  0x53   :  { %412 = vmatpush1.msra.mxu0 %v389_v18  ;;  %483 = vmatpush1.msra.mxu1 %v391_v19  ;;  %v347_v63 = vld [vmem:[#allocation11 + $0x30] sm:$0xff]  ;;  %v342_v1 = vld [vmem:[#allocation11 + $0x8] sm:$0xff]  ;;  %v344_v2 = vld [vmem:[#allocation11 + $0x18] sm:$0xff]  ;;  %v312_v18 = vunpack.c.0.s8 %v311_v13 }
  0x54   :  { %413 = vmatprep.subr.mxu0 %v386_v20  ;;  %484 = vmatprep.subr.mxu1 %v388_v21  ;;  %v341_v3 = vld [vmem:[#allocation11] sm:$0xff]  ;;  %v343_v4 = vld [vmem:[#allocation11 + $0x10] sm:$0xff]  ;;  %v338_v5 = vld [vmem:[%s912_s2] sm:$0x1] }
  0x55   :  { %414 = vmatpush1.msra.mxu0 %v385_v22  ;;  %485 = vmatpush1.msra.mxu1 %v387_v23  ;;  %v140_v10 = vld [vmem:[%s916_s6] sm:$0xf] }
  0x56   :  { %415 = vmatprep.subr.mxu0 %v382_v24  ;;  %486 = vmatprep.subr.mxu1 %v384_v25  ;;  %v145_v15 = vrot.slane %v140_v10, %v144_v8  ;;  %v153_v16 = vrot.slane %v140_v10, %v152_v9  ;;  %v149_v17 = vrot.slane %v140_v10, %v148_v11 }
  0x57   :  { %416 = vmatpush1.msra.mxu0 %v381_v26  ;;  %487 = vmatpush1.msra.mxu1 %v383_v27  ;;  %v157_v19 = vrot.slane %v140_v10, %v156_v14  ;;  %v315_v26 = vsub.s32 %v312_v18, %v143_v7 }
  0x58   :  { %417 = vmatprep.subr.mxu0 %v378_v28  ;;  %488 = vmatprep.subr.mxu1 %v380_v29 }
  0x59   :  { %418 = vmatpush1.msra.mxu0 %v377_v30  ;;  %489 = vmatpush1.msra.mxu1 %v379_v31 }
  0x5a   :  { %419 = vmatprep.subr.mxu0 %v374_v32  ;;  %490 = vmatprep.subr.mxu1 %v376_v33 }
  0x5b   :  { %420 = vmatpush1.msra.mxu0 %v373_v34  ;;  %491 = vmatpush1.msra.mxu1 %v375_v35 }
  0x5c   :  { %421 = vmatprep.subr.mxu0 %v370_v36  ;;  %492 = vmatprep.subr.mxu1 %v372_v37 }
  0x5d   :  { %422 = vmatpush1.msra.mxu0 %v369_v38  ;;  %493 = vmatpush1.msra.mxu1 %v371_v39 }
  0x5e   :  { %423 = vmatprep.subr.mxu0 %v366_v40  ;;  %494 = vmatprep.subr.mxu1 %v368_v41 }
  0x5f   :  { %424 = vmatpush1.msra.mxu0 %v365_v42  ;;  %495 = vmatpush1.msra.mxu1 %v367_v43 }
  0x60   :  { %425 = vmatprep.subr.mxu0 %v362_v44  ;;  %496 = vmatprep.subr.mxu1 %v364_v45 }
  0x61   :  { %426 = vmatpush1.msra.mxu0 %v361_v46  ;;  %497 = vmatpush1.msra.mxu1 %v363_v47 }
  0x62   :  { %427 = vmatprep.subr.mxu0 %v358_v48  ;;  %498 = vmatprep.subr.mxu1 %v360_v49 }
  0x63   :  { %428 = vmatpush1.msra.mxu0 %v357_v50  ;;  %499 = vmatpush1.msra.mxu1 %v359_v51 }
  0x64   :  { %429 = vmatprep.subr.mxu0 %v354_v52  ;;  %500 = vmatprep.subr.mxu1 %v356_v53 }
  0x65   :  { %430 = vmatpush1.msra.mxu0 %v353_v54  ;;  %501 = vmatpush1.msra.mxu1 %v355_v55 }
  0x66   :  { %431 = vmatprep.subr.mxu0 %v350_v56  ;;  %502 = vmatprep.subr.mxu1 %v352_v57 }
  0x67   :  { %432 = vmatpush1.msra.mxu0 %v349_v58  ;;  %503 = vmatpush1.msra.mxu1 %v351_v59  ;;  %v339_v58 = vld [vmem:[%s913_s3] sm:$0x1]  ;;  %s746_s3 = scalar_lea.vmem %s628_s11, 16 }
  0x68   :  { %433 = vmatprep.subr.mxu0 %v346_v60  ;;  %504 = vmatprep.subr.mxu1 %v348_v61  ;;  %p747_p1 = scmp.ne.s32.totalorder %s628_s11, %s746_s3  ;;  %p752_p3 = scmp.lt.s32.totalorder %s750_s16, %s746_s3 }
  0x69   :  { %434 = vmatpush1.msra.mxu0 %v345_v62  ;;  %505 = vmatpush1.msra.mxu1 %v347_v63 }
  0x6a   :  { %435 = vmatprep.subr.mxu0 %v342_v1  ;;  %506 = vmatprep.subr.mxu1 %v344_v2  ;;  %p753_p4 = por %p752_p3, %p751_p2 }
  0x6b   :  { %436 = vmatpush1.msra.mxu0 %v341_v3  ;;  %469 = vmatprep.mubr.f32.mxu0 %v821_v0 }
  0x6c   :  { %507 = vmatpush1.msra.mxu1 %v343_v4  ;;  %540 = vmatprep.mubr.f32.mxu1 %v821_v0  ;;  %p754_p5 = pnand %p753_p4, %p747_p1 }
  0x6d   :  { %470 = vmatmul.mubr.f32.vlgmr.msra.gmra.mxu0 %v338_v5  ;;  %541 = vmatmul.mubr.f32.vlgmr.msra.gmra.mxu1 %v338_v5 }
 0x10b   :  { %v228_v0 = vpop.f32.mrf.mxu0  ;;  %v299_v20 = vpop.f32.mrf.mxu1 }
 0x10c   :  { %v229_v21 = vadd.f32 %v228_v0, %v145_v15  ;;  %v300_v22 = vadd.f32 %v299_v20, %v153_v16 }
 0x10d   :  { %v230_v23 = vpop.f32.mrf.mxu0  ;;  %v301_v24 = vpop.f32.mrf.mxu1 }
 0x10e   :  { %v231_v25 = vadd.f32 %v230_v23, %v149_v17  ;;  %v302_v27 = vadd.f32 %v301_v24, %v157_v19 }
 0x110   :  { %v308_v28 = vcombine.low %v229_v21, %v231_v25  ;;  %v309_v29 = vcombine.low %v300_v22, %v302_v27 }
 0x112   :  { %v316_v30 = vrot.slane %v308_v28, %v315_v26  ;;  %v323_v31 = vrot.slane %v309_v29, %v315_v26 }
 0x114   :  { %v324_v32 = vcombine.low %v316_v30, %v323_v31 }
 0x116   :  { %v331_v33 = vrot.slane %v324_v32, %v315_v26 }
 0x118   :  { %337 = vst.msk [vmem:[#allocation3] sm:$0xf] %vm335_vm0, %v331_v33 }
 0x11f   :  { %v340_v44 = vld [vmem:[#allocation3] sm:$0xf] }
 0x12d   :  { %v471_v34 = vpop.f32.mrf.mxu0  ;;  %v542_v35 = vpop.f32.mrf.mxu1 }
 0x12f   :  { %v473_v36 = vpop.f32.mrf.mxu0  ;;  %v544_v37 = vpop.f32.mrf.mxu1 }
 0x130   :  { %v551_v38 = vcombine.low %v471_v34, %v473_v36  ;;  %v552_v39 = vcombine.low %v542_v35, %v544_v37 }
 0x132   :  { %v559_v40 = vrot.slane %v551_v38, %v315_v26  ;;  %v566_v41 = vrot.slane %v552_v39, %v315_v26 }
 0x134   :  { %v567_v42 = vcombine.low %v559_v40, %v566_v41 }
 0x136   :  { %v574_v43 = vrot.slane %v567_v42, %v315_v26 }
 0x138   :  { %v576_v45 = vadd.f32 %v574_v43, %v340_v44 }
 0x13a   :  { %v655_v46 = vmul.f32 -1.442695, %v576_v45  ;;  %v584_v47 = vrot.slane %v576_v45, 1  ;;  %v595_v49 = vrot.slane %v576_v45, 3  ;;  %v592_v52 = vrot.slane %v576_v45, 2 }
 0x13c   :  { %670 = vpow2.f32 %v655_v46  ;;  %v656_v48 = vmul.f32 -1.442695, %v584_v47  ;;  %v657_v50 = vmul.f32 -1.442695, %v595_v49 }
 0x13e   :  { %672 = vpow2.f32 %v656_v48 }
 0x13f   :  { %674 = vpow2.f32 %v657_v50 }
 0x149   :  { %v671_v51 = vpop.eup %670 }
 0x14a   :  { %v580_v53 = vadd.f32 1.0, %v671_v51 }
 0x14b   :  { %v673_v54 = vpop.eup %672 }
 0x14c   :  { %676 = vrcp.f32 %v580_v53  ;;  %v589_v55 = vadd.f32 1.0, %v673_v54  ;;  %v675_v56 = vpop.eup %674 }
 0x14d   :  { %678 = vtanh.f32 %v592_v52  ;;  %v600_v61 = vadd.f32 1.0, %v675_v56 }
 0x14e   :  { %680 = vrcp.f32 %v589_v55 }
 0x14f   :  { %682 = vrcp.f32 %v600_v61 }
 0x159   :  { %v677_v57 = vpop.eup %676 }
 0x15a   :  { %v679_v59 = vpop.eup %678 }
 0x15b   :  { %v681_v60 = vpop.eup %680  ;;  %v604_v63 = vmul.f32 %v679_v59, %v677_v57 }
 0x15c   :  { %v603_v62 = vmul.f32 %v681_v60, %v339_v58  ;;  %v683_v2 = vpop.eup %682 }
 0x15e   :  { %v605_v1 = vadd.f32 %v604_v63, %v603_v62 }
 0x160   :  { %684 = vtanh.f32 %v605_v1  ;;  %610 = vst [vmem:[#allocation15] sm:$0x1] %v605_v1 }
 0x16d   :  { %v685_v3 = vpop.eup %684 }
 0x16e   :  { %v607_v4 = vmul.f32 %v685_v3, %v683_v2 }
 0x170   :  { %609 = vst [vmem:[#allocation13] sm:$0x1] %v607_v4  ;;  %608 = vst [vmem:[#allocation12] sm:$0x1] %v607_v4 }
 0x171   :  { %757 = shalt.err (!%p754_p5)
}
 0x172   :  { %630 = dma.vmem_to_hbm [thread:$0]  %s628_s11, 16, %s918_s8, [#allocation14]  }
 0x173   :  { %s766_s19 = scalar_lea.vmem %s618_s13, 16  ;;  %s770_s20 = scalar_lea.vmem %s618_s13, 32 }
 0x174   :  { %p767_p6 = scmp.ne.s32.totalorder %s618_s13, %s766_s19  ;;  %p771_p7 = scmp.lt.s32.totalorder %s618_s13, %s618_s13 }
 0x175   :  { %p772_p8 = scmp.lt.s32.totalorder %s770_s20, %s766_s19 }
 0x177   :  { %p773_p9 = por %p772_p8, %p771_p7 }
 0x179   :  { %p774_p10 = pnand %p773_p9, %p767_p6 }
 0x17b   :  { %777 = shalt.err (!%p774_p10)
}
 0x17c   :  { %620 = dma.vmem_to_hbm [thread:$0]  %s618_s13, 16, %s917_s7, [#allocation8]  }
 0x17d   :  { %s786_s23 = scalar_lea.vmem %s638_s15, 16  ;;  %s790_s24 = scalar_lea.vmem %s638_s15, 32 }
 0x17e   :  { %p787_p11 = scmp.ne.s32.totalorder %s638_s15, %s786_s23  ;;  %p791_p12 = scmp.lt.s32.totalorder %s638_s15, %s638_s15 }
 0x17f   :  { %p792_p13 = scmp.lt.s32.totalorder %s790_s24, %s786_s23 }
 0x181   :  { %p793_p0 = por %p792_p13, %p791_p12 }
 0x183   :  { %p794_p1 = pnand %p793_p0, %p787_p11 }
 0x185   :  { %797 = shalt.err (!%p794_p1)
}
 0x186   :  { %640 = dma.vmem_to_hbm [thread:$0]  %s638_s15, 16, %s919_s9, [#allocation14]  }
 0x187   :  { %810 = dma.done.wait [#allocation8], 16  }
 0x188   :  { %811 = vsyncadd [#allocation8], 4294967280 }
 0x189   :  { %812 = dma.done.wait [#allocation14], 32  }
 0x18a   :  { %813 = vsyncadd [#allocation14], 4294967264 }
 0x18b   :  { %650 = vsyncpa [#allocation7], 1 }
 0x18c   :  { %651 = vsyncpa [#allocation10], 1 }
 0x18d   :  { %652 = vsyncpa [#allocation8], 1 }
 0x18e   :  { %653 = vsyncpa [#allocation14], 1 }

</bundles_post_ra>
